<compile_context>
chip_gen: v7x
topology: tpu7x:2x2x1
jax: 0.10.0
libtpu: 0.0.40
codegen_flags: <defaults>
</compile_context>

<pallas_src>
import jax
import jax.numpy as jnp
from jax.experimental import pallas as pl
from jax.experimental.pallas import tpu as pltpu


def _decoder_kernel(x_ref, w1_ref, b1_ref, w2_ref, b2_ref, out_ref):
    # fc1 + ReLU.  Tiny matmul (K = latent); bf16 x bf16 -> f32 on the MXU.
    x = x_ref[...].astype(jnp.bfloat16)
    h = jnp.dot(x, w1_ref[...], preferred_element_type=jnp.float32)
    h = jnp.maximum(h + b1_ref[...], 0.0)          # (TB, hidden) + (1, hidden)

    # fc2 + sigmoid.  Dominant matmul; streams bf16 weights, f32 accumulate.
    y = jnp.dot(h.astype(jnp.bfloat16), w2_ref[...],
                preferred_element_type=jnp.float32)
    y = jax.nn.sigmoid(y + b2_ref[...])            # (TB, TN) + (1, TN)

    out_ref[...] = y.astype(out_ref.dtype)


def _round_up(x, m):
    return ((x + m - 1) // m) * m


def _tensorcores_per_chip():
    """Best-effort: v7x exposes 2 TensorCores per chip; v5e/v6e expose 1."""
    try:
        kind = jax.devices()[0].device_kind.lower()
    except Exception:
        return 1
    if "v7" in kind or "7x" in kind:
        return 2
    return 1


def decoder_forward(x, w1_t, b1, w2_t, b2, *, output_h, output_w,
                    batch_tile=1024, out_dtype=jnp.float32):
    """x: (B, latent) f32.  w1_t: (latent, hidden) bf16, b1: (hidden,) f32,
    w2_t: (hidden, H*W) bf16, b2: (H*W,) f32.  Returns (B, 1, H, W)."""
    B, latent = x.shape
    hidden = w1_t.shape[1]
    out_dim = w2_t.shape[1]
    assert out_dim == output_h * output_w

    b1_2d = b1.reshape(1, hidden)
    b2_2d = b2.reshape(1, out_dim)

    # --- Batch tiling --------------------------------------------------------
    # Full batch in one block when small, otherwise TB-row tiles on a
    # "parallel" grid axis.  Weights/biases use constant index_maps so they
    # are DMA'd once and stay VMEM-resident across the whole grid.
    TB = B if B <= batch_tile else batch_tile
    nb = pl.cdiv(B, TB)

    # --- fc2 N-split (v7x only) ---------------------------------------------
    # When the batch grid is a single step, the "parallel" batch axis gives
    # the 2-TC chip nothing to shard, and the kernel is bound by streaming w2.
    # Split out_dim into 128-aligned chunks so each TensorCore streams half of
    # w2 and writes half of the output.  Skipped on 1-TC chips (pure overhead).
    n_split = 2 if (nb == 1 and _tensorcores_per_chip() >= 2) else 1
    if n_split > 1 and out_dim > 128:
        TN = min(out_dim, _round_up(pl.cdiv(out_dim, n_split), 128))
    else:
        TN = out_dim
    nn = pl.cdiv(out_dim, TN)

    grid = (nb, nn)

    # --- VMEM budget ---------------------------------------------------------
    # Double-buffered x/out tiles + double-buffered resident weights/biases.
    # Default TB=1024, TN=out_dim => ~8 MB: fits every gen's default scoped
    # VMEM (16 MiB v5e, 32 MiB v6e/v7x).  Only raise the limit when the
    # estimate exceeds the smallest default; cap below v7x's 64 MiB physical.
    out_elt = jnp.dtype(out_dtype).itemsize
    est_bytes = (2 * TB * latent * 4          # x tiles (f32, double-buffered)
                 + 2 * TB * TN * out_elt      # out tiles (double-buffered)
                 + 2 * (latent * hidden + hidden * TN) * 2   # bf16 weights
                 + 2 * (hidden + TN) * 4)                    # f32 biases
    vmem_limit = None
    if est_bytes > 14 * 1024 * 1024:
        vmem_limit = min(int(est_bytes * 1.25), 56 * 1024 * 1024)

    out_flat = pl.pallas_call(
        _decoder_kernel,
        out_shape=jax.ShapeDtypeStruct((B, out_dim), out_dtype),
        grid_spec=pltpu.PrefetchScalarGridSpec(
            num_scalar_prefetch=0,
            grid=grid,
            in_specs=[
                pl.BlockSpec((TB, latent), lambda i, j: (i, 0)),     # x: batch-tiled
                pl.BlockSpec((latent, hidden), lambda i, j: (0, 0)),  # w1: resident
                pl.BlockSpec((1, hidden), lambda i, j: (0, 0)),       # b1: resident
                pl.BlockSpec((hidden, TN), lambda i, j: (0, j)),      # w2: N-sliced
                pl.BlockSpec((1, TN), lambda i, j: (0, j)),           # b2: N-sliced
            ],
            out_specs=pl.BlockSpec((TB, TN), lambda i, j: (i, j)),
        ),
        compiler_params=pltpu.CompilerParams(
            # Both axes independent: megacore shards batch tiles at large B,
            # or the fc2 N chunks at small B (v7x).
            dimension_semantics=("parallel", "parallel"),
            vmem_limit_bytes=vmem_limit),
    )(x, w1_t, b1_2d, w2_t, b2_2d)

    return out_flat.reshape(B, 1, output_h, output_w)


def init_decoder_params(key, latent_size, hidden_size, output_h, output_w):
    """Deterministic init mirroring nn.Linear default (uniform +-1/sqrt(fan_in)).

    Weights are returned pre-transposed ((in, out) layout) and in bf16 so the
    forward pass needs no XLA-side transpose and streams half the bytes.
    Converting a PyTorch checkpoint is a one-time `w.T.astype(bf16)` at load.
    """
    out_dim = output_h * output_w
    k1, k2, k3, k4 = jax.random.split(key, 4)
    bound1 = 1.0 / jnp.sqrt(latent_size)
    bound2 = 1.0 / jnp.sqrt(hidden_size)
    w1_t = jax.random.uniform(k1, (latent_size, hidden_size), jnp.float32,
                              -bound1, bound1).astype(jnp.bfloat16)
    b1 = jax.random.uniform(k2, (hidden_size,), jnp.float32, -bound1, bound1)
    w2_t = jax.random.uniform(k3, (hidden_size, out_dim), jnp.float32,
                              -bound2, bound2).astype(jnp.bfloat16)
    b2 = jax.random.uniform(k4, (out_dim,), jnp.float32, -bound2, bound2)
    return w1_t, b1, w2_t, b2


if __name__ == "__main__":
    # Small, module-consistent shapes (Decoder defaults).
    batch = 2
    latent_size = 10
    hidden_size = 400
    output_h = output_w = 28

    key = jax.random.PRNGKey(0)
    k_x, k_p = jax.random.split(key)
    x = jax.random.normal(k_x, (batch, latent_size), jnp.float32)
    w1_t, b1, w2_t, b2 = init_decoder_params(
        k_p, latent_size, hidden_size, output_h, output_w)

    out = decoder_forward(x, w1_t, b1, w2_t, b2,
                          output_h=output_h, output_w=output_w)
    out = jax.block_until_ready(out)

    # Pure-JAX reference using the same bf16-quantized weights / bf16 MXU
    # operands (so only accumulation order / sigmoid approx differ).
    w1_f = w1_t.astype(jnp.float32)
    w2_f = w2_t.astype(jnp.float32)
    x_b = x.astype(jnp.bfloat16).astype(jnp.float32)
    h_ref = jnp.maximum(x_b @ w1_f + b1, 0.0)
    h_b = h_ref.astype(jnp.bfloat16).astype(jnp.float32)
    y_ref = jax.nn.sigmoid(h_b @ w2_f + b2).reshape(
        batch, 1, output_h, output_w)

    assert out.shape == (batch, 1, output_h, output_w)
    assert jnp.allclose(out, y_ref, atol=5e-3, rtol=5e-3)
    assert bool(jnp.all((out >= 0.0) & (out <= 1.0)))

    print("KERNEL_OK")
</pallas_src>

<mosaic_0001>
module attributes {stable_mosaic.version = 11 : i64} {
  func.func @_decoder_kernel(%arg0: i32, %arg1: i32, %arg2: memref<2x10xf32, #tpu.memory_space<vmem>>, %arg3: memref<10x400xbf16, #tpu.memory_space<vmem>>, %arg4: memref<1x400xf32, #tpu.memory_space<vmem>>, %arg5: memref<400x784xbf16, #tpu.memory_space<vmem>>, %arg6: memref<1x784xf32, #tpu.memory_space<vmem>>, %arg7: memref<2x784xf32, #tpu.memory_space<vmem>>) attributes {dimension_semantics = [#tpu.dimension_semantics<parallel>, #tpu.dimension_semantics<parallel>], iteration_bounds = array<i64: 1, 1>, scalar_prefetch = 0 : i64, scratch_operands = 0 : i64, tpu.core_type = #tpu.core_type<tc>, window_params = [{transform_indices = @transform_0, window_bounds = array<i64: 2, 10>}, {pipeline_mode = #tpu.pipeline_mode<synchronous>, transform_indices = @transform_1, window_bounds = array<i64: 10, 400>}, {pipeline_mode = #tpu.pipeline_mode<synchronous>, transform_indices = @transform_2, window_bounds = array<i64: 1, 400>}, {transform_indices = @transform_3, window_bounds = array<i64: 400, 784>}, {transform_indices = @transform_4, window_bounds = array<i64: 1, 784>}, {transform_indices = @transform_5, window_bounds = array<i64: 2, 784>}]} {
    %c0 = arith.constant 0 : index
    %c0_0 = arith.constant 0 : index
    %0 = vector.load %arg2[%c0, %c0_0] : memref<2x10xf32, #tpu.memory_space<vmem>>, vector<2x10xf32>
    %1 = arith.truncf %0 : vector<2x10xf32> to vector<2x10xbf16>
    %c0_1 = arith.constant 0 : index
    %c0_2 = arith.constant 0 : index
    %2 = vector.load %arg3[%c0_1, %c0_2] : memref<10x400xbf16, #tpu.memory_space<vmem>>, vector<10x400xbf16>
    %cst = arith.constant dense<0.000000e+00> : vector<2x400xf32>
    %3 = tpu.matmul %1, %2, %cst {dimension_numbers = #tpu.dot_dimension_numbers<[1], [0], [0], [1], [0, 0, 1, 1], [], []>} : vector<2x10xbf16>, vector<10x400xbf16>, vector<2x400xf32> -> vector<2x400xf32>
    %c0_3 = arith.constant 0 : index
    %c0_4 = arith.constant 0 : index
    %4 = vector.load %arg4[%c0_3, %c0_4] : memref<1x400xf32, #tpu.memory_space<vmem>>, vector<1x400xf32>
    %5 = vector.broadcast %4 : vector<1x400xf32> to vector<2x400xf32>
    %6 = arith.addf %3, %5 : vector<2x400xf32>
    %cst_5 = arith.constant 0.000000e+00 : f32
    %7 = vector.broadcast %cst_5 : f32 to vector<2x400xf32>
    %8 = arith.maximumf %6, %7 : vector<2x400xf32>
    %9 = arith.truncf %8 : vector<2x400xf32> to vector<2x400xbf16>
    %c0_6 = arith.constant 0 : index
    %c0_7 = arith.constant 0 : index
    %10 = vector.load %arg5[%c0_6, %c0_7] : memref<400x784xbf16, #tpu.memory_space<vmem>>, vector<400x784xbf16>
    %cst_8 = arith.constant dense<0.000000e+00> : vector<2x784xf32>
    %11 = tpu.matmul %9, %10, %cst_8 {dimension_numbers = #tpu.dot_dimension_numbers<[1], [0], [0], [1], [0, 0, 1, 1], [], []>} : vector<2x400xbf16>, vector<400x784xbf16>, vector<2x784xf32> -> vector<2x784xf32>
    %c0_9 = arith.constant 0 : index
    %c0_10 = arith.constant 0 : index
    %12 = vector.load %arg6[%c0_9, %c0_10] : memref<1x784xf32, #tpu.memory_space<vmem>>, vector<1x784xf32>
    %13 = vector.broadcast %12 : vector<1x784xf32> to vector<2x784xf32>
    %14 = arith.addf %11, %13 : vector<2x784xf32>
    %15 = arith.negf %14 : vector<2x784xf32>
    %16 = math.exp %15 : vector<2x784xf32>
    %cst_11 = arith.constant 1.000000e+00 : f32
    %17 = vector.broadcast %cst_11 : f32 to vector<2x784xf32>
    %18 = arith.addf %17, %16 : vector<2x784xf32>
    %19 = arith.divf %17, %18 : vector<2x784xf32>
    %c0_12 = arith.constant 0 : index
    %c0_13 = arith.constant 0 : index
    %20 = vector.load %arg7[%c0_12, %c0_13] : memref<2x784xf32, #tpu.memory_space<vmem>>, vector<2x784xf32>
    tpu.vector_store %arg7[%c0_12, %c0_13], %19 {strides = array<i32>} : memref<2x784xf32, #tpu.memory_space<vmem>>, vector<2x784xf32>,
    return
  }
  func.func @transform_0(%arg0: i32, %arg1: i32) -> (i32, i32) {
    %c0_i32 = arith.constant 0 : i32
    %c0_i32_0 = arith.constant 0 : i32
    return %arg0, %c0_i32 : i32, i32
  }
  func.func @transform_1(%arg0: i32, %arg1: i32) -> (i32, i32) {
    %c0_i32 = arith.constant 0 : i32
    %c0_i32_0 = arith.constant 0 : i32
    %c0_i32_1 = arith.constant 0 : i32
    return %c0_i32, %c0_i32_0 : i32, i32
  }
  func.func @transform_2(%arg0: i32, %arg1: i32) -> (i32, i32) {
    %c0_i32 = arith.constant 0 : i32
    %c0_i32_0 = arith.constant 0 : i32
    %c0_i32_1 = arith.constant 0 : i32
    return %c0_i32, %c0_i32_0 : i32, i32
  }
  func.func @transform_3(%arg0: i32, %arg1: i32) -> (i32, i32) {
    %c0_i32 = arith.constant 0 : i32
    %c0_i32_0 = arith.constant 0 : i32
    return %c0_i32, %arg1 : i32, i32
  }
  func.func @transform_4(%arg0: i32, %arg1: i32) -> (i32, i32) {
    %c0_i32 = arith.constant 0 : i32
    %c0_i32_0 = arith.constant 0 : i32
    return %c0_i32, %arg1 : i32, i32
  }
  func.func @transform_5(%arg0: i32, %arg1: i32) -> (i32, i32) {
    %c0_i32 = arith.constant 0 : i32
    return %arg0, %arg1 : i32, i32
  }
}

</mosaic_0001>

<bundles_post_ra>
// kernel: tpu_custom_call.1
= control target key start
LH: loop header
LB: loop body
LE: loop exit
PB: predicated region body
PF: predicated region fallthrough
CT: control target
= control target key end

     0   :  { %10 = vsyncpa [#allocation3], 0  ;;  %s2584_s0 = inlined_call_operand.hbm [shape: f32[2,10], index: 0, kind: input, shape index: {}]   ;;  %s2585_s1 = inlined_call_operand.hbm [shape: bf16[10,400], index: 1, kind: input, shape index: {}]   ;;  %s2586_s2 = inlined_call_operand.vmem [shape: f32[1,400], index: 2, kind: input, shape index: {}]   ;;  %s2587_s3 = inlined_call_operand.hbm [shape: bf16[400,784], index: 3, kind: input, shape index: {}]   ;;  %s2588_s4 = inlined_call_operand.vmem [shape: f32[1,784], index: 4, kind: input, shape index: {}]   ;;  %s2589_s5 = inlined_call_operand.hbm [shape: f32[2,784], index: 5, kind: output, shape index: {}]  }
   0x1   :  { %11 = vsyncpa [#allocation6], 0 }
   0x2   :  { %12 = vsyncpa [#allocation4], 0  ;;  %s2408_s18 = smov [#allocation5]   ;;  %s2314_s22 = scalar_lea.hbm %s2585_s1, 512 }
   0x3   :  { %s28_s19 = sshll.u32 %s2408_s18, 4  ;;  %p2315_p0 = scmp.ne.s32.totalorder %s2585_s1, %s2314_s22  ;;  %s29_s19 = int_to_ptr.vmem [resolvable:$true] %s28_s19 }
   0x4   :  { %p2318_p1 = scmp.lt.u32.totalorder %s2314_s22, %s2585_s1 }
   0x6   :  { %p2320_p2 = pnand %p2318_p1, %p2315_p0 }
   0x8   :  { %2323 = shalt.err (!%p2320_p2)
}
   0x9   :  { %s2324_s27 = scalar_lea.vmem %s29_s19, 512  ;;  %p2329_p4 = scmp.lt.s32.totalorder %s29_s19, %s29_s19 }
   0xa   :  { %p2325_p3 = scmp.ne.s32.totalorder %s29_s19, %s2324_s27  ;;  %p2330_p5 = scmp.lt.s32.totalorder %s2324_s27, %s2324_s27 }
   0xc   :  { %p2331_p6 = por %p2330_p5, %p2329_p4 }
   0xe   :  { %p2332_p7 = pnand %p2331_p6, %p2325_p3 }
  0x10   :  { %2335 = shalt.err (!%p2332_p7)
}
  0x11   :  { %s2409_s28 = smov 256   ;;  %s2410_s29 = smov 16  }
  0x12   :  { %34 = dma.hbm_to_vmem [thread:$0]  %s2585_s1, 512, %s29_s19, [#allocation6], %s2409_s28, %s2409_s28, %s2410_s29  }
  0x13   :  { %s2411_s7 = smov [#allocation2]   ;;  %s2412_s9 = smov [#allocation7]  }
  0x14   :  { %s19_s8 = sshll.u32 %s2411_s7, 4  ;;  %s42_s10 = sshll.u32 %s2412_s9, 4  ;;  %s20_s8 = int_to_ptr.vmem [resolvable:$true] %s19_s8  ;;  %s43_s10 = int_to_ptr.vmem [resolvable:$true] %s42_s10 }
  0x15   :  { %s2336_s13 = scalar_lea.hbm %s2584_s0, 32 }
  0x16   :  { %p2337_p8 = scmp.ne.s32.totalorder %s2584_s0, %s2336_s13  ;;  %p2340_p9 = scmp.lt.u32.totalorder %s2336_s13, %s2584_s0 }
  0x18   :  { %p2342_p10 = pnand %p2340_p9, %p2337_p8 }
  0x1a   :  { %2345 = shalt.err (!%p2342_p10)
}
  0x1b   :  { %s2346_s1 = scalar_lea.vmem %s20_s8, 32  ;;  %p2351_p12 = scmp.lt.s32.totalorder %s20_s8, %s20_s8 }
  0x1c   :  { %p2347_p11 = scmp.ne.s32.totalorder %s20_s8, %s2346_s1  ;;  %p2352_p13 = scmp.lt.s32.totalorder %s2346_s1, %s2346_s1 }
  0x1e   :  { %p2353_p0 = por %p2352_p13, %p2351_p12 }
  0x20   :  { %p2354_p1 = pnand %p2353_p0, %p2347_p11 }
  0x22   :  { %2357 = shalt.err (!%p2354_p1)
}
  0x23   :  { %22 = dma.hbm_to_vmem [thread:$0]  %s2584_s0, 32, %s20_s8, [#allocation3]  }
  0x24   :  { %s2358_s22 = scalar_lea.hbm %s2587_s3, 22400 }
  0x25   :  { %p2359_p2 = scmp.ne.s32.totalorder %s2587_s3, %s2358_s22  ;;  %p2362_p3 = scmp.lt.u32.totalorder %s2358_s22, %s2587_s3 }
  0x27   :  { %p2364_p4 = pnand %p2362_p3, %p2359_p2 }
  0x29   :  { %2367 = shalt.err (!%p2364_p4)
}
  0x2a   :  { %s2368_s27 = scalar_lea.vmem %s43_s10, 22400  ;;  %p2373_p6 = scmp.lt.s32.totalorder %s43_s10, %s43_s10 }
  0x2b   :  { %p2369_p5 = scmp.ne.s32.totalorder %s43_s10, %s2368_s27  ;;  %p2374_p7 = scmp.lt.s32.totalorder %s2368_s27, %s2368_s27 }
  0x2d   :  { %p2375_p8 = por %p2374_p7, %p2373_p6 }
  0x2f   :  { %p2376_p9 = pnand %p2375_p8, %p2369_p5 }
  0x31   :  { %2379 = shalt.err (!%p2376_p9)
}
  0x32   :  { %s2413_s0 = smov 448   ;;  %s2414_s28 = smov 28  }
  0x33   :  { %48 = dma.hbm_to_vmem [thread:$0]  %s2587_s3, 22400, %s43_s10, [#allocation6], %s2413_s0, %s2413_s0, %s2414_s28  }
  0x34   :  { %2402 = dma.done.wait [#allocation3], 32  }
  0x35   :  { %2403 = vsyncadd [#allocation3], 4294967264 }
  0x36   :  { %2404 = dma.done.wait [#allocation6], 22912  }
  0x37   :  { %2405 = vsyncadd [#allocation6], 4294944384  ;;  %v2415_v0 = vmov 0   ;;  %vm109_vm0 = vcmask 1044480   ;;  %v61_v3 = vld [vmem:[#allocation2] sm:$0x3] }
  0x38   :  { %154 = vmatprep.mubr.bf16.mxu1 %v2415_v0  ;;  %v2030_v1 = vld [vmem:[#allocation5 + $0x4] ss:$16 sps:$4 sm:$0x1f]   ;;  %v2032_v2 = vld [vmem:[#allocation5] ss:$16 sps:$4 sm:$0x1f]   ;;  %v62_v6 = vpack.c.bf16 %v61_v3, %v61_v3 }
  0x39   :  { %1790 = vmatprep.subr.msk.bf16.mxu1 %vm109_vm0, %v2030_v1  ;;  %v2033_v4 = vld [vmem:[#allocation5 + $0xc] ss:$16 sps:$4 sm:$0x1f]   ;;  %v111_v5 = vsel %vm109_vm0, %v2032_v2, 0  ;;  %vm105_vm1 = vcmask 80896   ;;  %vm1349_vm2 = vcmask 130048  }
  0x3a   :  { %v2035_v7 = vld [vmem:[#allocation5 + $0x8] ss:$16 sps:$4 sm:$0x1f]   ;;  %123 = vmatpush1.bf16.msra.mxu1 %v111_v5  ;;  %v2036_v8 = vld [vmem:[#allocation7 + $0x4] ss:$28 sps:$4 sm:$0xff]   ;;  %vm1764_vm3 = vcmask 1041408  }
  0x3b   :  { %1792 = vmatprep.subr.msk.bf16.mxu1 %vm109_vm0, %v2033_v4  ;;  %v117_v9 = vsel %vm109_vm0, %v2035_v7, 0  ;;  %v2040_v10 = vld [vmem:[#allocation7 + $0xc] ss:$28 sps:$4 sm:$0xff]   ;;  %v2041_v11 = vld [vmem:[#allocation7] ss:$28 sps:$4 sm:$0xff]   ;;  %1353 = vmatprep.subr.bf16.mxu0 %v2036_v8  ;;  %vm1765_vm4 = vcmask 1043458  }
  0x3c   :  { %v2042_v12 = vld [vmem:[#allocation7 + $0x3c] ss:$28 sps:$4 sm:$0xff]   ;;  %1354 = vmatpush1.bf16.msra.mxu0 %v2041_v11  ;;  %v2048_v14 = vld [vmem:[#allocation7 + $0x74] ss:$28 sps:$4 sm:$0xff]   ;;  %v2038_v15 = vld [vmem:[#allocation7 + $0x8] ss:$28 sps:$4 sm:$0xff]  }
  0x3d   :  { %1791 = vmatmul.mubr.msk.bf16.vlgmr.msra.gmra.mrb[0].mxu1 %vm105_vm1, %v62_v6  ;;  %v2047_v13 = vld [vmem:[#allocation7 + $0x38] ss:$28 sps:$4 sm:$0xff]   ;;  %1355 = vmatprep.subr.bf16.mxu0 %v2042_v12  ;;  %v2053_v16 = vld [vmem:[#allocation7 + $0x70] ss:$28 sps:$4 sm:$0xff]   ;;  %v2046_v18 = vld [vmem:[#allocation7 + $0x44] ss:$28 sps:$4 sm:$0xff]   ;;  %v69_v12 = vlaneseq }
  0x3e   :  { %164 = vmatpush1.bf16.msra.mxu1 %v117_v9  ;;  %195 = vmatprep.mubr.bf16.mxu1 %v2415_v0  ;;  %v2054_v17 = vld [vmem:[#allocation7 + $0xac] ss:$28 sps:$4 sm:$0xff]   ;;  %v2044_v19 = vld [vmem:[#allocation7 + $0x40] ss:$28 sps:$4 sm:$0xff]   ;;  %v2050_v23 = vld [vmem:[#allocation7 + $0x78] ss:$28 sps:$4 sm:$0xff]  }
  0x3f   :  { %1435 = vmatprep.subr.bf16.mxu1 %v2040_v10  ;;  %v2059_v20 = vld [vmem:[#allocation7 + $0xa8] ss:$28 sps:$4 sm:$0xff]   ;;  %v2052_v22 = vld [vmem:[#allocation7 + $0x7c] ss:$28 sps:$4 sm:$0xff]   ;;  %v2058_v26 = vld [vmem:[#allocation7 + $0xb4] ss:$28 sps:$4 sm:$0xff]  }
  0x40   :  { %1356 = vmatpush1.bf16.msra.mxu0 %v2047_v13  ;;  %v2060_v21 = vld [vmem:[#allocation7 + $0xe4] ss:$28 sps:$4 sm:$0xff]   ;;  %v2066_v25 = vld [vmem:[#allocation7 + $0x11c] ss:$28 sps:$4 sm:$0xff]   ;;  %v2056_v27 = vld [vmem:[#allocation7 + $0xb0] ss:$28 sps:$4 sm:$0xff]  }
  0x41   :  { %1357 = vmatprep.subr.bf16.mxu0 %v2048_v14  ;;  %v2065_v24 = vld [vmem:[#allocation7 + $0xe0] ss:$28 sps:$4 sm:$0xff]   ;;  %v2071_v28 = vld [vmem:[#allocation7 + $0x118] ss:$28 sps:$4 sm:$0xff]   ;;  %v2064_v30 = vld [vmem:[#allocation7 + $0xec] ss:$28 sps:$4 sm:$0xff]  }
  0x42   :  { %v2072_v29 = vld [vmem:[#allocation7 + $0x154] ss:$28 sps:$4 sm:$0xff]   ;;  %v2062_v31 = vld [vmem:[#allocation7 + $0xe8] ss:$28 sps:$4 sm:$0xff]   ;;  %v2068_v35 = vld [vmem:[#allocation7 + $0x120] ss:$28 sps:$4 sm:$0xff]  }
  0x43   :  { %v2077_v32 = vld [vmem:[#allocation7 + $0x150] ss:$28 sps:$4 sm:$0xff]   ;;  %v2070_v34 = vld [vmem:[#allocation7 + $0x124] ss:$28 sps:$4 sm:$0xff]   ;;  %v2076_v38 = vld [vmem:[#allocation7 + $0x15c] ss:$28 sps:$4 sm:$0xff]  }
  0x44   :  { %1358 = vmatpush1.bf16.msra.mxu0 %v2053_v16  ;;  %v2078_v33 = vld [vmem:[#allocation7 + $0x18c] ss:$28 sps:$4 sm:$0xff]   ;;  %v2084_v37 = vld [vmem:[#allocation7 + $0x1c4] ss:$28 sps:$4 sm:$0xff]   ;;  %v2074_v39 = vld [vmem:[#allocation7 + $0x158] ss:$28 sps:$4 sm:$0xff]  }
  0x45   :  { %1793 = vmatmul.mubr.msk.bf16.vlgmr.msra.gmra.mrb[4].mxu1 %vm105_vm1, %v62_v6  ;;  %1359 = vmatprep.subr.bf16.mxu0 %v2054_v17  ;;  %v2083_v36 = vld [vmem:[#allocation7 + $0x188] ss:$28 sps:$4 sm:$0xff]   ;;  %v2089_v40 = vld [vmem:[#allocation7 + $0x1c0] ss:$28 sps:$4 sm:$0xff]   ;;  %v2082_v42 = vld [vmem:[#allocation7 + $0x194] ss:$28 sps:$4 sm:$0xff]  }
  0x46   :  { %1436 = vmatpush1.bf16.msra.mxu1 %v2038_v15  ;;  %v2090_v41 = vld [vmem:[#allocation7 + $0x1fc] ss:$28 sps:$4 sm:$0xff]   ;;  %v2080_v43 = vld [vmem:[#allocation7 + $0x190] ss:$28 sps:$4 sm:$0xff]   ;;  %v2086_v48 = vld [vmem:[#allocation7 + $0x1c8] ss:$28 sps:$4 sm:$0xff]  }
  0x47   :  { %1437 = vmatprep.subr.bf16.mxu1 %v2046_v18  ;;  %v2095_v44 = vld [vmem:[#allocation7 + $0x1f8] ss:$28 sps:$4 sm:$0xff]   ;;  %v2088_v45 = vld [vmem:[#allocation7 + $0x1cc] ss:$28 sps:$4 sm:$0xff]   ;;  %v2094_v50 = vld [vmem:[#allocation7 + $0x204] ss:$28 sps:$4 sm:$0xff]  }
  0x48   :  { %1360 = vmatpush1.bf16.msra.mxu0 %v2059_v20  ;;  %v2096_v46 = vld [vmem:[#allocation7 + $0x234] ss:$28 sps:$4 sm:$0xff]   ;;  %v2102_v49 = vld [vmem:[#allocation7 + $0x26c] ss:$28 sps:$4 sm:$0xff]   ;;  %v2092_v52 = vld [vmem:[#allocation7 + $0x200] ss:$28 sps:$4 sm:$0xff]  }
  0x49   :  { %1361 = vmatprep.subr.bf16.mxu0 %v2060_v21  ;;  %v2101_v47 = vld [vmem:[#allocation7 + $0x230] ss:$28 sps:$4 sm:$0xff]   ;;  %v2107_v51 = vld [vmem:[#allocation7 + $0x268] ss:$28 sps:$4 sm:$0xff]   ;;  %v2100_v54 = vld [vmem:[#allocation7 + $0x23c] ss:$28 sps:$4 sm:$0xff]  }
  0x4a   :  { %1438 = vmatpush1.bf16.msra.mxu1 %v2044_v19  ;;  %v2108_v53 = vld [vmem:[#allocation7 + $0x2a4] ss:$28 sps:$4 sm:$0xff]   ;;  %v2098_v56 = vld [vmem:[#allocation7 + $0x238] ss:$28 sps:$4 sm:$0xff]   ;;  %v2104_v60 = vld [vmem:[#allocation7 + $0x270] ss:$28 sps:$4 sm:$0xff]  }
  0x4b   :  { %1439 = vmatprep.subr.bf16.mxu1 %v2052_v22  ;;  %v2113_v55 = vld [vmem:[#allocation7 + $0x2a0] ss:$28 sps:$4 sm:$0xff]   ;;  %v2106_v58 = vld [vmem:[#allocation7 + $0x274] ss:$28 sps:$4 sm:$0xff]   ;;  %v2112_v61 = vld [vmem:[#allocation7 + $0x2ac] ss:$28 sps:$4 sm:$0xff]  }
  0x4c   :  { %1362 = vmatpush1.bf16.msra.mxu0 %v2065_v24  ;;  %v2114_v57 = vld [vmem:[#allocation7 + $0x2dc] ss:$28 sps:$4 sm:$0xff]   ;;  %v2110_v62 = vld [vmem:[#allocation7 + $0x2a8] ss:$28 sps:$4 sm:$0xff]   ;;  %v2120_v2 = vld [vmem:[#allocation7 + $0x314] ss:$28 sps:$4 sm:$0xff]  }
  0x4d   :  { %1363 = vmatprep.subr.bf16.mxu0 %v2066_v25  ;;  %v2119_v59 = vld [vmem:[#allocation7 + $0x2d8] ss:$28 sps:$4 sm:$0xff]   ;;  %v2118_v63 = vld [vmem:[#allocation7 + $0x2e4] ss:$28 sps:$4 sm:$0xff]   ;;  %v2125_v5 = vld [vmem:[#allocation7 + $0x310] ss:$28 sps:$4 sm:$0xff]  }
  0x4e   :  { %1440 = vmatpush1.bf16.msra.mxu1 %v2050_v23  ;;  %v2116_v1 = vld [vmem:[#allocation7 + $0x2e0] ss:$28 sps:$4 sm:$0xff]   ;;  %v2122_v4 = vld [vmem:[#allocation7 + $0x318] ss:$28 sps:$4 sm:$0xff]   ;;  %v2126_v6 = vld [vmem:[#allocation7 + $0x34c] ss:$28 sps:$4 sm:$0xff]  }
  0x4f   :  { %1441 = vmatprep.subr.bf16.mxu1 %v2058_v26  ;;  %v2124_v3 = vld [vmem:[#allocation7 + $0x31c] ss:$28 sps:$4 sm:$0xff]   ;;  %v2130_v7 = vld [vmem:[#allocation7 + $0x354] ss:$28 sps:$4 sm:$0xff]   ;;  %v2131_v9 = vld [vmem:[#allocation7 + $0x348] ss:$28 sps:$4 sm:$0xff]  }
  0x50   :  { %1364 = vmatpush1.bf16.msra.mxu0 %v2071_v28  ;;  %v2128_v8 = vld [vmem:[#allocation7 + $0x350] ss:$28 sps:$4 sm:$0xff]   ;;  %v2134_v10 = vld [vmem:[#allocation7 + $0x384] ss:$28 sps:$4 sm:$0xff]   ;;  %v2488_v13 = vshrl.u32 %v69_v12, 7  ;;  %vm1766_vm5 = vmor %vm1765_vm4, %vm1764_vm3  ;;  %vm1767_vm6 = vcmask 128004  }
  0x51   :  { %1365 = vmatprep.subr.bf16.mxu0 %v2072_v29  ;;  %v2137_v11 = vld [vmem:[#allocation7 + $0x38c] ss:$28 sps:$4 sm:$0xff]   ;;  %v2132_v29 = vld [vmem:[#allocation7 + $0x380] ss:$28 sps:$4 sm:$0xff]   ;;  %vm1768_vm7 = vmor %vm1767_vm6, %vm1766_vm5 }
  0x52   :  { %1442 = vmatpush1.bf16.msra.mxu1 %v2056_v27  ;;  %v71_v14 = vsub.s32 0, %v2488_v13  ;;  %v2494_v15 = vld [vmem:[%s2586_s2] sm:$0xf]  ;;  %v75_v16 = vsub.s32 1, %v2488_v13  ;;  %v83_v24 = vsub.s32 3, %v2488_v13 }
  0x53   :  { %1443 = vmatprep.subr.bf16.mxu1 %v2064_v30  ;;  %v2135_v30 = vld [vmem:[#allocation7 + $0x388] ss:$28 sps:$4 sm:$0xff]  }
  0x54   :  { %1366 = vmatpush1.bf16.msra.mxu0 %v2077_v32  ;;  %v72_v17 = vrot.slane %v2494_v15, %v71_v14  ;;  %v76_v18 = vrot.slane %v2494_v15, %v75_v16  ;;  %v2183_v12 = vld [vmem:[#allocation7 + $0x548] ss:$28 sps:$4 sm:$0xff]  }
  0x55   :  { %1367 = vmatprep.subr.bf16.mxu0 %v2078_v33  ;;  %v2140_v33 = vld [vmem:[#allocation7 + $0x3bc] ss:$28 sps:$4 sm:$0xff]  }
  0x56   :  { %1444 = vmatpush1.bf16.msra.mxu1 %v2062_v31  ;;  %v84_v31 = vrot.slane %v2494_v15, %v83_v24 }
  0x57   :  { %1445 = vmatprep.subr.bf16.mxu1 %v2070_v34  ;;  %v2143_v34 = vld [vmem:[#allocation7 + $0x3c4] ss:$28 sps:$4 sm:$0xff]  }
  0x58   :  { %1368 = vmatpush1.bf16.msra.mxu0 %v2083_v36 }
  0x59   :  { %1369 = vmatprep.subr.bf16.mxu0 %v2084_v37  ;;  %v2138_v37 = vld [vmem:[#allocation7 + $0x3b8] ss:$28 sps:$4 sm:$0xff]  }
  0x5a   :  { %1446 = vmatpush1.bf16.msra.mxu1 %v2068_v35 }
  0x5b   :  { %1447 = vmatprep.subr.bf16.mxu1 %v2076_v38  ;;  %v2141_v38 = vld [vmem:[#allocation7 + $0x3c0] ss:$28 sps:$4 sm:$0xff]  }
  0x5c   :  { %1370 = vmatpush1.bf16.msra.mxu0 %v2089_v40 }
  0x5d   :  { %1371 = vmatprep.subr.bf16.mxu0 %v2090_v41  ;;  %v2146_v41 = vld [vmem:[#allocation7 + $0x3f4] ss:$28 sps:$4 sm:$0xff]  }
  0x5e   :  { %1448 = vmatpush1.bf16.msra.mxu1 %v2074_v39 }
  0x5f   :  { %1449 = vmatprep.subr.bf16.mxu1 %v2082_v42  ;;  %v2149_v42 = vld [vmem:[#allocation7 + $0x3fc] ss:$28 sps:$4 sm:$0xff]  }
  0x60   :  { %1372 = vmatpush1.bf16.msra.mxu0 %v2095_v44 }
  0x61   :  { %1373 = vmatprep.subr.bf16.mxu0 %v2096_v46  ;;  %v2147_v46 = vld [vmem:[#allocation7 + $0x3f8] ss:$28 sps:$4 sm:$0xff]  }
  0x62   :  { %1450 = vmatpush1.bf16.msra.mxu1 %v2080_v43 }
  0x63   :  { %1451 = vmatprep.subr.bf16.mxu1 %v2088_v45  ;;  %v2144_v45 = vld [vmem:[#allocation7 + $0x3f0] ss:$28 sps:$4 sm:$0xff]  }
  0x64   :  { %1374 = vmatpush1.bf16.msra.mxu0 %v2101_v47 }
  0x65   :  { %1375 = vmatprep.subr.bf16.mxu0 %v2102_v49  ;;  %v2155_v49 = vld [vmem:[#allocation7 + $0x434] ss:$28 sps:$4 sm:$0xff]  }
  0x66   :  { %1452 = vmatpush1.bf16.msra.mxu1 %v2086_v48  ;;  %v2152_v48 = vld [vmem:[#allocation7 + $0x42c] ss:$28 sps:$4 sm:$0xff]  }
  0x67   :  { %1453 = vmatprep.subr.bf16.mxu1 %v2094_v50  ;;  %v2150_v50 = vld [vmem:[#allocation7 + $0x428] ss:$28 sps:$4 sm:$0xff]  }
  0x68   :  { %1376 = vmatpush1.bf16.msra.mxu0 %v2107_v51  ;;  %v2153_v51 = vld [vmem:[#allocation7 + $0x430] ss:$28 sps:$4 sm:$0xff]  }
  0x69   :  { %1377 = vmatprep.subr.bf16.mxu0 %v2108_v53  ;;  %v2161_v53 = vld [vmem:[#allocation7 + $0x46c] ss:$28 sps:$4 sm:$0xff]  }
  0x6a   :  { %1454 = vmatpush1.bf16.msra.mxu1 %v2092_v52  ;;  %v2158_v52 = vld [vmem:[#allocation7 + $0x464] ss:$28 sps:$4 sm:$0xff]  }
  0x6b   :  { %1455 = vmatprep.subr.bf16.mxu1 %v2100_v54  ;;  %v2156_v54 = vld [vmem:[#allocation7 + $0x460] ss:$28 sps:$4 sm:$0xff]  }
  0x6c   :  { %1378 = vmatpush1.bf16.msra.mxu0 %v2113_v55  ;;  %v2159_v55 = vld [vmem:[#allocation7 + $0x468] ss:$28 sps:$4 sm:$0xff]  }
  0x6d   :  { %1379 = vmatprep.subr.bf16.mxu0 %v2114_v57  ;;  %v2167_v57 = vld [vmem:[#allocation7 + $0x4a4] ss:$28 sps:$4 sm:$0xff]  }
  0x6e   :  { %1456 = vmatpush1.bf16.msra.mxu1 %v2098_v56  ;;  %v2164_v56 = vld [vmem:[#allocation7 + $0x49c] ss:$28 sps:$4 sm:$0xff]  }
  0x6f   :  { %1457 = vmatprep.subr.bf16.mxu1 %v2106_v58  ;;  %v79_v58 = vsub.s32 2, %v2488_v13 }
  0x70   :  { %1380 = vmatpush1.bf16.msra.mxu0 %v2119_v59  ;;  %v2162_v59 = vld [vmem:[#allocation7 + $0x498] ss:$28 sps:$4 sm:$0xff]  }
  0x71   :  { %1381 = vmatprep.subr.bf16.mxu0 %v2120_v2  ;;  %v2171_v2 = vld [vmem:[#allocation7 + $0x4d8] ss:$28 sps:$4 sm:$0xff]  }
  0x72   :  { %1458 = vmatpush1.bf16.msra.mxu1 %v2104_v60  ;;  %v2165_v60 = vld [vmem:[#allocation7 + $0x4a0] ss:$28 sps:$4 sm:$0xff]  }
  0x73   :  { %1459 = vmatprep.subr.bf16.mxu1 %v2112_v61  ;;  %v2170_v61 = vld [vmem:[#allocation7 + $0x4d4] ss:$28 sps:$4 sm:$0xff]  }
  0x74   :  { %1382 = vmatpush1.bf16.msra.mxu0 %v2125_v5 }
  0x75   :  { %1383 = vmatprep.subr.bf16.mxu0 %v2126_v6  ;;  %v2174_v6 = vld [vmem:[#allocation7 + $0x508] ss:$28 sps:$4 sm:$0xff]  }
  0x76   :  { %1460 = vmatpush1.bf16.msra.mxu1 %v2110_v62  ;;  %v2173_v62 = vld [vmem:[#allocation7 + $0x4dc] ss:$28 sps:$4 sm:$0xff]  }
  0x77   :  { %1461 = vmatprep.subr.bf16.mxu1 %v2118_v63  ;;  %v80_v63 = vrot.slane %v2494_v15, %v79_v58  ;;  %v2188_v15 = vld [vmem:[#allocation7 + $0x14] ss:$28 sps:$4 sm:$0xff]  }
  0x78   :  { %1384 = vmatpush1.bf16.msra.mxu0 %v2131_v9  ;;  %v2185_v9 = vld [vmem:[#allocation7 + $0x54c] ss:$28 sps:$4 sm:$0xff]  }
  0x79   :  { %1394 = vmatprep.subr.bf16.mxu0 %v2134_v10 }
  0x7a   :  { %1462 = vmatpush1.bf16.msra.mxu1 %v2116_v1  ;;  %v2168_v1 = vld [vmem:[#allocation7 + $0x4d0] ss:$28 sps:$4 sm:$0xff]  }
  0x7b   :  { %1463 = vmatprep.subr.bf16.mxu1 %v2124_v3  ;;  %v2176_v3 = vld [vmem:[#allocation7 + $0x50c] ss:$28 sps:$4 sm:$0xff]  }
  0x7e   :  { %1464 = vmatpush1.bf16.msra.mxu1 %v2122_v4  ;;  %v2179_v4 = vld [vmem:[#allocation7 + $0x514] ss:$28 sps:$4 sm:$0xff]  }
  0x7f   :  { %1465 = vmatprep.subr.bf16.mxu1 %v2130_v7  ;;  %v2177_v7 = vld [vmem:[#allocation7 + $0x510] ss:$28 sps:$4 sm:$0xff]  }
  0x82   :  { %1466 = vmatpush1.bf16.msra.mxu1 %v2128_v8  ;;  %v2182_v8 = vld [vmem:[#allocation7 + $0x544] ss:$28 sps:$4 sm:$0xff]  }
  0x83   :  { %1476 = vmatprep.subr.bf16.mxu1 %v2137_v11  ;;  %v2180_v11 = vld [vmem:[#allocation7 + $0x540] ss:$28 sps:$4 sm:$0xff]  }
 0x110   :  { %v156_v19 = vpop.f32.mrb[0].mxu1 }
 0x111   :  { %v157_v20 = vadd.f32 %v156_v19, %v72_v17  ;;  %v158_v21 = vpop.f32.mrb[1].mxu1  ;;  %v2189_v17 = vld [vmem:[#allocation7 + $0x1d8] ss:$28 sps:$4 sm:$0xff]   ;;  %v2186_v19 = vld [vmem:[#allocation7 + $0x10] ss:$28 sps:$4 sm:$0xff]  }
 0x112   :  { %v159_v22 = vadd.f32 %v158_v21, %v76_v18  ;;  %v160_v23 = vpop.f32.mrb[2].mxu1  ;;  %v2193_v21 = vld [vmem:[#allocation7 + $0x4c] ss:$28 sps:$4 sm:$0xff]  }
 0x113   :  { %v204_v25 = vmax.f32 %v157_v20, 0.0  ;;  %v161_v26 = vpop.f32.mrb[3].mxu1  ;;  %v2190_v20 = vld [vmem:[#allocation7 + $0x18] ss:$28 sps:$4 sm:$0xff]   ;;  %v2191_v23 = vld [vmem:[#allocation7 + $0x48] ss:$28 sps:$4 sm:$0xff]  }
 0x114   :  { %v205_v27 = vmax.f32 %v159_v22, 0.0  ;;  %v2194_v22 = vld [vmem:[#allocation7 + $0x210] ss:$28 sps:$4 sm:$0xff]   ;;  %v2198_v26 = vld [vmem:[#allocation7 + $0x84] ss:$28 sps:$4 sm:$0xff]  }
 0x115   :  { %v2509_v32 = vpack.c.bf16 %v204_v25, %v204_v25  ;;  %v2195_v25 = vld [vmem:[#allocation7 + $0x50] ss:$28 sps:$4 sm:$0xff]  }
 0x116   :  { %v2504_v28 = vpack.c.bf16 %v205_v27, %v205_v27  ;;  %v2199_v27 = vld [vmem:[#allocation7 + $0x248] ss:$28 sps:$4 sm:$0xff]  }
 0x118   :  { %1385 = vmatprep.mubr.bf16.mxu0 %v2504_v28  ;;  %1467 = vmatprep.mubr.bf16.mxu1 %v2504_v28  ;;  %v197_v35 = vpop.f32.mrb[4].mxu1 }
 0x119   :  { %1386 = vmatmul.mubr.bf16.vlgmr.msra.gmra.mrb[0].mxu0 %v2509_v32  ;;  %1468 = vmatmul.mubr.bf16.vlgmr.msra.gmra.mrb[8].mxu1 %v2509_v32  ;;  %v199_v36 = vpop.f32.mrb[5].mxu1  ;;  %v198_v5 = vadd.f32 %v197_v35, %v80_v63  ;;  %v2205_v35 = vld [vmem:[#allocation7 + $0xc0] ss:$28 sps:$4 sm:$0xff]   ;;  %v2238_v63 = vld [vmem:[#allocation7 + $0x278] ss:$28 sps:$4 sm:$0xff]  }
 0x11a   :  { %1395 = vmatpush1.bf16.msra.mxu0 %v2132_v29  ;;  %1477 = vmatpush1.bf16.msra.mxu1 %v2135_v30  ;;  %v200_v39 = vadd.f32 %v199_v36, %v84_v31  ;;  %v201_v40 = vpop.f32.mrb[6].mxu1  ;;  %v2196_v29 = vld [vmem:[#allocation7 + $0x80] ss:$28 sps:$4 sm:$0xff]   ;;  %v2200_v30 = vld [vmem:[#allocation7 + $0x88] ss:$28 sps:$4 sm:$0xff]  }
 0x11b   :  { %1396 = vmatprep.subr.bf16.mxu0 %v2140_v33  ;;  %1478 = vmatprep.subr.bf16.mxu1 %v2143_v34  ;;  %v202_v43 = vpop.f32.mrb[7].mxu1  ;;  %v206_v10 = vmax.f32 %v198_v5, 0.0  ;;  %v2203_v31 = vld [vmem:[#allocation7 + $0xbc] ss:$28 sps:$4 sm:$0xff]   ;;  %v2208_v36 = vld [vmem:[#allocation7 + $0xf4] ss:$28 sps:$4 sm:$0xff]  }
 0x11c   :  { %v207_v44 = vmax.f32 %v200_v39, 0.0  ;;  %v2204_v33 = vld [vmem:[#allocation7 + $0x280] ss:$28 sps:$4 sm:$0xff]   ;;  %v2201_v34 = vld [vmem:[#allocation7 + $0xb8] ss:$28 sps:$4 sm:$0xff]  }
 0x11d   :  { %v2525_v18 = vpack.c.bf16 %v206_v10, %v206_v10  ;;  %v2213_v39 = vld [vmem:[#allocation7 + $0x12c] ss:$28 sps:$4 sm:$0xff]   ;;  %v2218_v43 = vld [vmem:[#allocation7 + $0x164] ss:$28 sps:$4 sm:$0xff]  }
 0x11e   :  { %1397 = vmatpush1.bf16.msra.mxu0 %v2138_v37  ;;  %1479 = vmatpush1.bf16.msra.mxu1 %v2141_v38  ;;  %v2515_v47 = vpack.c.bf16 %v207_v44, %v207_v44  ;;  %v2206_v37 = vld [vmem:[#allocation7 + $0xf0] ss:$28 sps:$4 sm:$0xff]   ;;  %v2210_v38 = vld [vmem:[#allocation7 + $0xf8] ss:$28 sps:$4 sm:$0xff]   ;;  %v2219_v44 = vld [vmem:[#allocation7 + $0x328] ss:$28 sps:$4 sm:$0xff]  }
 0x11f   :  { %1398 = vmatprep.subr.bf16.mxu0 %v2146_v41  ;;  %1480 = vmatprep.subr.bf16.mxu1 %v2149_v42  ;;  %v2214_v40 = vld [vmem:[#allocation7 + $0x2f0] ss:$28 sps:$4 sm:$0xff]   ;;  %v2211_v41 = vld [vmem:[#allocation7 + $0x128] ss:$28 sps:$4 sm:$0xff]  }
 0x120   :  { %1969 = vmatprep.mubr.msk.bf16.mxu0 %vm1349_vm2, %v2515_v47  ;;  %1970 = vmatprep.mubr.msk.bf16.mxu1 %vm1349_vm2, %v2515_v47  ;;  %v2215_v42 = vld [vmem:[#allocation7 + $0x130] ss:$28 sps:$4 sm:$0xff]   ;;  %v2253_v10 = vld [vmem:[#allocation7 + $0x4e8] ss:$28 sps:$4 sm:$0xff]  }
 0x121   :  { %v2248_v5 = vld [vmem:[#allocation7 + $0x2ec] ss:$28 sps:$4 sm:$0xff]  }
 0x122   :  { %1399 = vmatpush1.bf16.msra.mxu0 %v2144_v45  ;;  %1481 = vmatpush1.bf16.msra.mxu1 %v2147_v46  ;;  %v2216_v45 = vld [vmem:[#allocation7 + $0x160] ss:$28 sps:$4 sm:$0xff]   ;;  %v2220_v46 = vld [vmem:[#allocation7 + $0x168] ss:$28 sps:$4 sm:$0xff]  }
 0x123   :  { %1400 = vmatprep.subr.bf16.mxu0 %v2152_v48  ;;  %1482 = vmatprep.subr.bf16.mxu1 %v2155_v49  ;;  %v2223_v48 = vld [vmem:[#allocation7 + $0x19c] ss:$28 sps:$4 sm:$0xff]  }
 0x124   :  { %v2224_v49 = vld [vmem:[#allocation7 + $0x360] ss:$28 sps:$4 sm:$0xff]  }
 0x126   :  { %1401 = vmatpush1.bf16.msra.mxu0 %v2150_v50  ;;  %1483 = vmatpush1.bf16.msra.mxu1 %v2153_v51  ;;  %v2221_v50 = vld [vmem:[#allocation7 + $0x198] ss:$28 sps:$4 sm:$0xff]   ;;  %v2225_v51 = vld [vmem:[#allocation7 + $0x1a0] ss:$28 sps:$4 sm:$0xff]  }
 0x127   :  { %1402 = vmatprep.subr.bf16.mxu0 %v2158_v52  ;;  %1484 = vmatprep.subr.bf16.mxu1 %v2161_v53  ;;  %v2228_v52 = vld [vmem:[#allocation7 + $0x1d4] ss:$28 sps:$4 sm:$0xff]  }
 0x128   :  { %v2226_v53 = vld [vmem:[#allocation7 + $0x1d0] ss:$28 sps:$4 sm:$0xff]  }
 0x12a   :  { %1403 = vmatpush1.bf16.msra.mxu0 %v2156_v54  ;;  %1485 = vmatpush1.bf16.msra.mxu1 %v2159_v55  ;;  %v2229_v54 = vld [vmem:[#allocation7 + $0x398] ss:$28 sps:$4 sm:$0xff]   ;;  %v2232_v55 = vld [vmem:[#allocation7 + $0x20c] ss:$28 sps:$4 sm:$0xff]  }
 0x12b   :  { %1404 = vmatprep.subr.bf16.mxu0 %v2164_v56  ;;  %1486 = vmatprep.subr.bf16.mxu1 %v2167_v57  ;;  %v2230_v56 = vld [vmem:[#allocation7 + $0x208] ss:$28 sps:$4 sm:$0xff]   ;;  %v2233_v57 = vld [vmem:[#allocation7 + $0x3d0] ss:$28 sps:$4 sm:$0xff]  }
 0x12e   :  { %1405 = vmatpush1.bf16.msra.mxu0 %v2162_v59  ;;  %1487 = vmatpush1.bf16.msra.mxu1 %v2165_v60  ;;  %v2236_v59 = vld [vmem:[#allocation7 + $0x244] ss:$28 sps:$4 sm:$0xff]  }
 0x12f   :  { %1406 = vmatprep.subr.bf16.mxu0 %v2170_v61  ;;  %1488 = vmatprep.subr.bf16.mxu1 %v2173_v62  ;;  %v2234_v60 = vld [vmem:[#allocation7 + $0x240] ss:$28 sps:$4 sm:$0xff]   ;;  %v2237_v61 = vld [vmem:[#allocation7 + $0x408] ss:$28 sps:$4 sm:$0xff]  }
 0x130   :  { %v2240_v62 = vld [vmem:[#allocation7 + $0x27c] ss:$28 sps:$4 sm:$0xff]  }
 0x132   :  { %1407 = vmatpush1.bf16.msra.mxu0 %v2168_v1  ;;  %1489 = vmatpush1.bf16.msra.mxu1 %v2171_v2  ;;  %v2241_v1 = vld [vmem:[#allocation7 + $0x440] ss:$28 sps:$4 sm:$0xff]   ;;  %v2244_v2 = vld [vmem:[#allocation7 + $0x2b4] ss:$28 sps:$4 sm:$0xff]  }
 0x133   :  { %1408 = vmatprep.subr.bf16.mxu0 %v2176_v3  ;;  %1490 = vmatprep.subr.bf16.mxu1 %v2179_v4  ;;  %v2242_v3 = vld [vmem:[#allocation7 + $0x2b0] ss:$28 sps:$4 sm:$0xff]   ;;  %v2245_v4 = vld [vmem:[#allocation7 + $0x478] ss:$28 sps:$4 sm:$0xff]  }
 0x136   :  { %1409 = vmatpush1.bf16.msra.mxu0 %v2174_v6  ;;  %1491 = vmatpush1.bf16.msra.mxu1 %v2177_v7  ;;  %v2246_v6 = vld [vmem:[#allocation7 + $0x2e8] ss:$28 sps:$4 sm:$0xff]   ;;  %v2249_v7 = vld [vmem:[#allocation7 + $0x4b0] ss:$28 sps:$4 sm:$0xff]  }
 0x137   :  { %1410 = vmatprep.subr.bf16.mxu0 %v2182_v8  ;;  %1492 = vmatprep.subr.bf16.mxu1 %v2185_v9  ;;  %v2252_v8 = vld [vmem:[#allocation7 + $0x324] ss:$28 sps:$4 sm:$0xff]  }
 0x138   :  { %v2250_v9 = vld [vmem:[#allocation7 + $0x320] ss:$28 sps:$4 sm:$0xff]  }
 0x13a   :  { %1411 = vmatpush1.bf16.msra.mxu0 %v2180_v11  ;;  %1493 = vmatpush1.bf16.msra.mxu1 %v2183_v12  ;;  %v2256_v11 = vld [vmem:[#allocation7 + $0x35c] ss:$28 sps:$4 sm:$0xff]  }
 0x13b   :  { %1517 = vmatprep.subr.bf16.mxu0 %v2188_v15  ;;  %1980 = vmatprep.subr.bf16.mxu1 %v2189_v17  ;;  %v2254_v12 = vld [vmem:[#allocation7 + $0x358] ss:$28 sps:$4 sm:$0xff]   ;;  %v2257_v15 = vld [vmem:[#allocation7 + $0x520] ss:$28 sps:$4 sm:$0xff]  }
 0x13c   :  { %v2260_v17 = vld [vmem:[#allocation7 + $0x394] ss:$28 sps:$4 sm:$0xff]  }
 0x13d   :  { %1427 = vmatmul.mubr.bf16.vlgmr.msra.gmra.mrb[0].mxu0 %v2525_v18  ;;  %1509 = vmatmul.mubr.bf16.vlgmr.msra.gmra.mrb[8].mxu1 %v2525_v18 }
 0x13e   :  { %1518 = vmatpush1.bf16.msra.mxu0 %v2186_v19  ;;  %1549 = vmatprep.mubr.bf16.mxu0 %v2504_v28  ;;  %v2258_v19 = vld [vmem:[#allocation7 + $0x390] ss:$28 sps:$4 sm:$0xff]  }
 0x13f   :  { %1981 = vmatpush3.bf16.msra.mxu1 %v2190_v20  ;;  %1631 = vmatprep.mubr.bf16.mxu1 %v2504_v28  ;;  %v2209_v28 = vld [vmem:[#allocation7 + $0x2b8] ss:$28 sps:$4 sm:$0xff]  }
 0x140   :  { %1519 = vmatprep.subr.bf16.mxu0 %v2193_v21  ;;  %1982 = vmatprep.subr.bf16.mxu1 %v2194_v22  ;;  %v2261_v20 = vld [vmem:[#allocation7 + $0x558] ss:$28 sps:$4 sm:$0xff]   ;;  %v2264_v21 = vld [vmem:[#allocation7 + $0x3cc] ss:$28 sps:$4 sm:$0xff]  }
 0x141   :  { %v2262_v22 = vld [vmem:[#allocation7 + $0x3c8] ss:$28 sps:$4 sm:$0xff]  }
 0x142   :  { %1520 = vmatpush1.bf16.msra.mxu0 %v2191_v23  ;;  %v2267_v23 = vld [vmem:[#allocation7 + $0x404] ss:$28 sps:$4 sm:$0xff]  }
 0x143   :  { %1983 = vmatpush3.bf16.msra.mxu1 %v2195_v25  ;;  %1521 = vmatprep.subr.bf16.mxu0 %v2198_v26  ;;  %v2265_v25 = vld [vmem:[#allocation7 + $0x400] ss:$28 sps:$4 sm:$0xff]  }
 0x144   :  { %1984 = vmatprep.subr.bf16.mxu1 %v2199_v27  ;;  %v2270_v26 = vld [vmem:[#allocation7 + $0x43c] ss:$28 sps:$4 sm:$0xff]  }
 0x145   :  { %v2268_v27 = vld [vmem:[#allocation7 + $0x438] ss:$28 sps:$4 sm:$0xff]  }
 0x146   :  { %1522 = vmatpush1.bf16.msra.mxu0 %v2196_v29  ;;  %v2276_v29 = vld [vmem:[#allocation7 + $0x4ac] ss:$28 sps:$4 sm:$0xff]  }
 0x147   :  { %1985 = vmatpush3.bf16.msra.mxu1 %v2200_v30  ;;  %1523 = vmatprep.subr.bf16.mxu0 %v2203_v31  ;;  %v2279_v30 = vld [vmem:[#allocation7 + $0x4e4] ss:$28 sps:$4 sm:$0xff]  }
 0x148   :  { %1986 = vmatprep.subr.bf16.mxu1 %v2204_v33  ;;  %v2277_v31 = vld [vmem:[#allocation7 + $0x4e0] ss:$28 sps:$4 sm:$0xff]  }
 0x149   :  { %v2282_v33 = vld [vmem:[#allocation7 + $0x51c] ss:$28 sps:$4 sm:$0xff]  }
 0x14a   :  { %1524 = vmatpush1.bf16.msra.mxu0 %v2201_v34  ;;  %v2280_v34 = vld [vmem:[#allocation7 + $0x518] ss:$28 sps:$4 sm:$0xff]  }
 0x14b   :  { %1987 = vmatpush3.bf16.msra.mxu1 %v2205_v35  ;;  %1525 = vmatprep.subr.bf16.mxu0 %v2208_v36  ;;  %v2285_v35 = vld [vmem:[#allocation7 + $0x554] ss:$28 sps:$4 sm:$0xff]  }
 0x14c   :  { %1988 = vmatprep.subr.bf16.mxu1 %v2209_v28  ;;  %v2283_v36 = vld [vmem:[#allocation7 + $0x550] ss:$28 sps:$4 sm:$0xff]  }
 0x14d   :  { %v2551_v28 = vld [vmem:[%s2588_s4] sm:$0x7f]  ;;  %s2417_s4 = smov [#allocation8]  }
 0x14e   :  { %1526 = vmatpush1.bf16.msra.mxu0 %v2206_v37  ;;  %v417_v37 = vrot.slane %v2551_v28, %v71_v14  ;;  %s1776_s8 = sshll.u32 %s2417_s4, 4  ;;  %s1777_s8 = int_to_ptr.vmem [resolvable:$true] %s1776_s8 }
 0x14f   :  { %1989 = vmatpush3.bf16.msra.mxu1 %v2210_v38  ;;  %1527 = vmatprep.subr.bf16.mxu0 %v2213_v39  ;;  %v425_v38 = vrot.slane %v2551_v28, %v79_v58  ;;  %v421_v39 = vrot.slane %v2551_v28, %v75_v16  ;;  %s2380_s9 = scalar_lea.vmem %s1777_s8, 224  ;;  %p2385_p11 = scmp.lt.s32.totalorder %s1777_s8, %s1777_s8 }
 0x150   :  { %1990 = vmatprep.subr.bf16.mxu1 %v2214_v40  ;;  %p2381_p10 = scmp.ne.s32.totalorder %s1777_s8, %s2380_s9  ;;  %p2386_p12 = scmp.lt.s32.totalorder %s2380_s9, %s2380_s9 }
 0x152   :  { %1528 = vmatpush1.bf16.msra.mxu0 %v2211_v41  ;;  %p2387_p13 = por %p2386_p12, %p2385_p11 }
 0x153   :  { %1991 = vmatpush3.bf16.msra.mxu1 %v2215_v42  ;;  %1529 = vmatprep.subr.bf16.mxu0 %v2218_v43 }
 0x154   :  { %1992 = vmatprep.subr.bf16.mxu1 %v2219_v44  ;;  %p2388_p0 = pnand %p2387_p13, %p2381_p10 }
 0x156   :  { %1530 = vmatpush1.bf16.msra.mxu0 %v2216_v45 }
 0x157   :  { %1993 = vmatpush3.bf16.msra.mxu1 %v2220_v46  ;;  %1531 = vmatprep.subr.bf16.mxu0 %v2223_v48 }
 0x158   :  { %1994 = vmatprep.subr.bf16.mxu1 %v2224_v49 }
 0x15a   :  { %1532 = vmatpush1.bf16.msra.mxu0 %v2221_v50 }
 0x15b   :  { %1995 = vmatpush3.bf16.msra.mxu1 %v2225_v51  ;;  %1533 = vmatprep.subr.bf16.mxu0 %v2228_v52 }
 0x15c   :  { %1639 = vmatprep.subr.bf16.mxu1 %v2415_v0 }
 0x15e   :  { %1632 = vmatmul.mubr.bf16.vlgmr.msra.gmra.mrb[12].mxu1 %v2509_v32  ;;  %1534 = vmatpush1.bf16.msra.mxu0 %v2226_v53 }
 0x15f   :  { %1640 = vmatpush1.bf16.msra.mxu1 %v2229_v54  ;;  %1972 = vmatprep.mubr.msk.bf16.mxu1 %vm1349_vm2, %v2515_v47 }
 0x160   :  { %1535 = vmatprep.subr.bf16.mxu0 %v2232_v55  ;;  %1641 = vmatprep.subr.bf16.mxu1 %v2415_v0 }
 0x162   :  { %1536 = vmatpush1.bf16.msra.mxu0 %v2230_v56 }
 0x163   :  { %1642 = vmatpush1.bf16.msra.mxu1 %v2233_v57  ;;  %1537 = vmatprep.subr.bf16.mxu0 %v2236_v59 }
 0x164   :  { %1643 = vmatprep.subr.bf16.mxu1 %v2415_v0 }
 0x166   :  { %1538 = vmatpush1.bf16.msra.mxu0 %v2234_v60 }
 0x167   :  { %1644 = vmatpush1.bf16.msra.mxu1 %v2237_v61  ;;  %1539 = vmatprep.subr.bf16.mxu0 %v2240_v62  ;;  %v2416_v62 = vmov 1983009808  }
 0x168   :  { %1645 = vmatprep.subr.bf16.mxu1 %v2415_v0 }
 0x16a   :  { %1540 = vmatpush1.bf16.msra.mxu0 %v2238_v63  ;;  %v1731_v63 = vunpack.c.l.s4 %v2416_v62 }
 0x16b   :  { %1646 = vmatpush1.bf16.msra.mxu1 %v2241_v1  ;;  %1541 = vmatprep.subr.bf16.mxu0 %v2244_v2 }
 0x16c   :  { %1647 = vmatprep.subr.bf16.mxu1 %v2415_v0  ;;  %v1732_v1 = vunpack.c.0.s8 %v1731_v63 }
 0x16e   :  { %1542 = vmatpush1.bf16.msra.mxu0 %v2242_v3 }
 0x16f   :  { %1648 = vmatpush1.bf16.msra.mxu1 %v2245_v4  ;;  %1543 = vmatprep.subr.bf16.mxu0 %v2248_v5  ;;  %v1735_v4 = vsub.s32 %v1732_v1, %v2488_v13 }
 0x170   :  { %1649 = vmatprep.subr.bf16.mxu1 %v2415_v0 }
 0x172   :  { %1544 = vmatpush1.bf16.msra.mxu0 %v2246_v6 }
 0x173   :  { %1650 = vmatpush1.bf16.msra.mxu1 %v2249_v7  ;;  %1545 = vmatprep.subr.bf16.mxu0 %v2252_v8 }
 0x174   :  { %1651 = vmatprep.subr.bf16.mxu1 %v2415_v0 }
 0x176   :  { %1546 = vmatpush1.bf16.msra.mxu0 %v2250_v9 }
 0x177   :  { %1652 = vmatpush1.bf16.msra.mxu1 %v2253_v10  ;;  %1547 = vmatprep.subr.bf16.mxu0 %v2256_v11 }
 0x178   :  { %1653 = vmatprep.subr.bf16.mxu1 %v2415_v0 }
 0x17a   :  { %1548 = vmatpush1.bf16.msra.mxu0 %v2254_v12 }
 0x17b   :  { %1654 = vmatpush1.bf16.msra.mxu1 %v2257_v15  ;;  %1558 = vmatprep.subr.bf16.mxu0 %v2260_v17 }
 0x17c   :  { %1655 = vmatprep.subr.bf16.mxu1 %v2415_v0  ;;  %v2273_v0 = vld [vmem:[#allocation7 + $0x474] ss:$28 sps:$4 sm:$0xff]  }
 0x17d   :  { %1550 = vmatmul.mubr.bf16.vlgmr.msra.gmra.mrb[4].mxu0 %v2509_v32  ;;  %v2271_v32 = vld [vmem:[#allocation7 + $0x470] ss:$28 sps:$4 sm:$0xff]  }
 0x17e   :  { %1559 = vmatpush1.bf16.msra.mxu0 %v2258_v19  ;;  %1971 = vmatprep.mubr.msk.bf16.mxu0 %vm1349_vm2, %v2515_v47  ;;  %v2274_v47 = vld [vmem:[#allocation7 + $0x4a8] ss:$28 sps:$4 sm:$0xff]  }
 0x17f   :  { %1656 = vmatpush1.bf16.msra.mxu1 %v2261_v20  ;;  %1560 = vmatprep.subr.bf16.mxu0 %v2264_v21  ;;  %v440_v21 = vsub.s32 6, %v2488_v13 }
 0x182   :  { %1672 = vmatmul.mubr.bf16.vlgmr.msra.gmra.mrb[16].mxu1 %v2525_v18  ;;  %1561 = vmatpush1.bf16.msra.mxu0 %v2262_v22  ;;  %v441_v22 = vrot.slane %v2551_v28, %v440_v21 }
 0x183   :  { %1562 = vmatprep.subr.bf16.mxu0 %v2267_v23 }
 0x186   :  { %1563 = vmatpush1.bf16.msra.mxu0 %v2265_v25 }
 0x187   :  { %1564 = vmatprep.subr.bf16.mxu0 %v2270_v26 }
 0x18a   :  { %1565 = vmatpush1.bf16.msra.mxu0 %v2268_v27 }
 0x18b   :  { %1566 = vmatprep.subr.bf16.mxu0 %v2273_v0 }
 0x18e   :  { %1567 = vmatpush1.bf16.msra.mxu0 %v2271_v32 }
 0x18f   :  { %1568 = vmatprep.subr.bf16.mxu0 %v2276_v29  ;;  %v432_v29 = vsub.s32 4, %v2488_v13 }
 0x192   :  { %1569 = vmatpush1.bf16.msra.mxu0 %v2274_v47  ;;  %v436_v47 = vsub.s32 5, %v2488_v13 }
 0x193   :  { %1570 = vmatprep.subr.bf16.mxu0 %v2279_v30 }
 0x196   :  { %1571 = vmatpush1.bf16.msra.mxu0 %v2277_v31  ;;  %v433_v31 = vrot.slane %v2551_v28, %v432_v29 }
 0x197   :  { %1572 = vmatprep.subr.bf16.mxu0 %v2282_v33  ;;  %v437_v33 = vrot.slane %v2551_v28, %v436_v47 }
 0x19a   :  { %1573 = vmatpush1.bf16.msra.mxu0 %v2280_v34 }
 0x19b   :  { %1574 = vmatprep.subr.bf16.mxu0 %v2285_v35 }
 0x19e   :  { %1575 = vmatpush1.bf16.msra.mxu0 %v2283_v36 }
 0x1a1   :  { %1591 = vmatmul.mubr.bf16.vlgmr.msra.gmra.mrb[4].mxu0 %v2525_v18  ;;  %v429_v18 = vrot.slane %v2551_v28, %v83_v24 }
 0x210   :  { %v1428_v40 = vpop.f32.mrb[0].mxu0  ;;  %v1510_v41 = vpop.f32.mrb[8].mxu1 }
 0x211   :  { %v2002_v42 = vadd.f32 %v1428_v40, %v417_v37  ;;  %v2004_v43 = vadd.f32 %v1510_v41, %v425_v38  ;;  %v1430_v44 = vpop.f32.mrb[1].mxu0  ;;  %v1512_v45 = vpop.f32.mrb[9].mxu1 }
 0x212   :  { %v2003_v46 = vadd.f32 %v1430_v44, %v421_v39  ;;  %v2005_v14 = vadd.f32 %v1512_v45, %v429_v18  ;;  %v1432_v48 = vpop.f32.mrb[2].mxu0  ;;  %v1514_v49 = vpop.f32.mrb[10].mxu1 }
 0x213   :  { %v1973_v50 = vmul.f32 -1.442695, %v2002_v42  ;;  %v1975_v58 = vmul.f32 -1.442695, %v2004_v43  ;;  %v1433_v51 = vpop.f32.mrb[3].mxu0  ;;  %v1515_v52 = vpop.f32.mrb[11].mxu1 }
 0x214   :  { %v1974_v53 = vmul.f32 -1.442695, %v2003_v46  ;;  %v1976_v16 = vmul.f32 -1.442695, %v2005_v14 }
 0x215   :  { %2286 = vpow2.f32 %v1973_v50 }
 0x216   :  { %2288 = vpow2.f32 %v1975_v58 }
 0x217   :  { %2290 = vpow2.f32 %v1974_v53 }
 0x218   :  { %2292 = vpow2.f32 %v1976_v16 }
 0x21f   :  { %v2287_v24 = vpop.eup %2286 }
 0x220   :  { %v2289_v54 = vpop.eup %2288  ;;  %v1700_v55 = vadd.f32 1.0, %v2287_v24 }
 0x221   :  { %v2291_v56 = vpop.eup %2290  ;;  %v1702_v57 = vadd.f32 1.0, %v2289_v54 }
 0x222   :  { %v2293_v59 = vpop.eup %2292  ;;  %2294 = vrcp.f32 %v1700_v55  ;;  %v1701_v60 = vadd.f32 1.0, %v2291_v56 }
 0x223   :  { %2296 = vrcp.f32 %v1702_v57  ;;  %v1703_v61 = vadd.f32 1.0, %v2293_v59 }
 0x224   :  { %2298 = vrcp.f32 %v1701_v60 }
 0x225   :  { %2300 = vrcp.f32 %v1703_v61 }
 0x22c   :  { %v2295_v2 = vpop.eup %2294 }
 0x22d   :  { %v2297_v3 = vpop.eup %2296 }
 0x22e   :  { %v2299_v5 = vpop.eup %2298 }
 0x22f   :  { %v2301_v6 = vpop.eup %2300  ;;  %v1728_v7 = vcombine.low %v2295_v2, %v2299_v5 }
 0x230   :  { %v1729_v8 = vcombine.low %v2297_v3, %v2301_v6 }
 0x231   :  { %v1996_v9 = vpop.f32.mrb[12].mxu1  ;;  %v1736_v10 = vrot.slane %v1728_v7, %v1735_v4 }
 0x232   :  { %v1997_v11 = vpop.f32.mrb[13].mxu1  ;;  %v1743_v12 = vrot.slane %v1729_v8, %v1735_v4 }
 0x233   :  { %v1998_v15 = vadd.f32 %v1997_v11, %v1996_v9  ;;  %v1999_v17 = vpop.f32.mrb[14].mxu1 }
 0x234   :  { %v2000_v19 = vpop.f32.mrb[15].mxu1  ;;  %v1744_v20 = vcombine.low %v1736_v10, %v1743_v12 }
 0x235   :  { %v1634_v23 = vadd.f32 %v1998_v15, %v441_v22 }
 0x236   :  { %1763 = vst [vmem:[#allocation8] sm:$0xff] %v1744_v20 }
 0x255   :  { %v1673_v25 = vpop.f32.mrb[16].mxu1 }
 0x256   :  { %v1674_v26 = vadd.f32 %v1673_v25, %v1634_v23  ;;  %v1675_v27 = vpop.f32.mrb[17].mxu1 }
 0x257   :  { %v1676_v0 = vpop.f32.mrb[18].mxu1 }
 0x258   :  { %v1677_v32 = vpop.f32.mrb[19].mxu1  ;;  %v1979_v30 = vmul.f32 -1.442695, %v1674_v26 }
 0x25a   :  { %2302 = vpow2.f32 %v1979_v30 }
 0x264   :  { %v2303_v41 = vpop.eup %2302 }
 0x265   :  { %v1706_v42 = vadd.f32 1.0, %v2303_v41 }
 0x274   :  { %v1592_v34 = vpop.f32.mrb[4].mxu0 }
 0x275   :  { %v2006_v35 = vadd.f32 %v1592_v34, %v433_v31  ;;  %v1594_v36 = vpop.f32.mrb[5].mxu0 }
 0x276   :  { %v2007_v37 = vadd.f32 %v1594_v36, %v437_v33  ;;  %v1596_v38 = vpop.f32.mrb[6].mxu0 }
 0x277   :  { %v1977_v39 = vmul.f32 -1.442695, %v2006_v35  ;;  %v1597_v18 = vpop.f32.mrb[7].mxu0 }
 0x278   :  { %v1978_v40 = vmul.f32 -1.442695, %v2007_v37 }
 0x279   :  { %2304 = vpow2.f32 %v1977_v39 }
 0x27a   :  { %2306 = vpow2.f32 %v1978_v40 }
 0x27b   :  { %2308 = vrcp.f32 %v1706_v42 }
 0x283   :  { %v2305_v43 = vpop.eup %2304 }
 0x284   :  { %v2307_v13 = vpop.eup %2306  ;;  %v1704_v44 = vadd.f32 1.0, %v2305_v43 }
 0x285   :  { %v1705_v45 = vadd.f32 1.0, %v2307_v13  ;;  %v2309_v28 = vpop.eup %2308 }
 0x286   :  { %2310 = vrcp.f32 %v1704_v44  ;;  %v1759_v50 = vrot.slane %v2309_v28, %v1735_v4 }
 0x287   :  { %2312 = vrcp.f32 %v1705_v45 }
 0x290   :  { %v2311_v46 = vpop.eup %2310 }
 0x291   :  { %v2313_v14 = vpop.eup %2312 }
 0x292   :  { %v1745_v48 = vcombine.low %v2311_v46, %v2313_v14 }
 0x294   :  { %v1752_v49 = vrot.slane %v1745_v48, %v1735_v4 }
 0x296   :  { %v1760_v58 = vcombine.low %v1752_v49, %v1759_v50 }
 0x298   :  { %1769 = vst.msk [vmem:[#allocation8 + $0x8] sm:$0x3f] %vm1768_vm7, %v1760_v58 }
 0x299   :  { %2391 = shalt.err (!%p2388_p0)
}
 0x29a   :  { %s2392_s12 = scalar_lea.hbm %s2589_s5, 224 }
 0x29b   :  { %p2393_p1 = scmp.ne.s32.totalorder %s2589_s5, %s2392_s12  ;;  %p2396_p2 = scmp.lt.u32.totalorder %s2392_s12, %s2589_s5 }
 0x29d   :  { %p2398_p3 = pnand %p2396_p2, %p2393_p1 }
 0x29f   :  { %2401 = shalt.err (!%p2398_p3)
}
 0x2a0   :  { %1779 = dma.vmem_to_hbm [thread:$0]  %s1777_s8, 224, %s2589_s5, [#allocation4]  }
 0x2a1   :  { %2406 = dma.done.wait [#allocation4], 224  }
 0x2a2   :  { %2407 = vsyncadd [#allocation4], 4294967072 }
 0x2a3   :  { %1783 = vsyncpa [#allocation3], 1 }
 0x2a4   :  { %1784 = vsyncpa [#allocation6], 1 }
 0x2a5   :  { %1785 = vsyncpa [#allocation4], 1 }

</bundles_post_ra>
